<compile_context>
chip_gen: v7x
topology: tpu7x:2x2x1
jax: 0.10.0
libtpu: 0.0.40
codegen_flags: <defaults>
</compile_context>

<pallas_src>
import functools

import jax
import jax.numpy as jnp
import numpy as np
from jax.experimental import pallas as pl
from jax.experimental.pallas import tpu as pltpu

# ---- module hyper-parameters (MLP defaults) ---------------------------------
CHANNELS = 3                                   # MLP input/output dim
HIDDEN = 256                                   # MLP(hidden_size=256)
FF_IN_DIM = 4                                  # FourierFeatsEncoding in_dim
NUM_FREQ = 6                                   # num_frequencies
SI_DIM = FF_IN_DIM * NUM_FREQ                  # 24 scaled-input columns
FOURIER_DIM = 2 * SI_DIM + FF_IN_DIM           # 52 (include_input=True)
OUT_PAD = 128                                  # lane-dense padded output width
TILE_ROWS = 1024                               # batch tile: fits v5e/v6e/v7x VMEM
# NOTE: MLP's `depth` arg and rff_module=nn.Identity() don't affect the forward
# computation (the Sequential hard-codes 5 Linear layers), so nothing to port.


# ---------------------------------------------------------------------------
# Pallas kernel: Fourier encoding (as a tiny matmul) + 5-layer MLP with Swish
# ---------------------------------------------------------------------------
def mlp_kernel(h_ref, s_ref,
               w1h_ref, w1s_ref, w1c_ref, b1_ref,
               w2_ref, b2_ref, w3_ref, b3_ref, w4_ref, b4_ref,
               w5_ref, b5_ref, o_ref):
    h = h_ref[...]                                            # (TN, 4) f32

    # Fourier features: si[:, i*6+f] = 2*pi*2^f * h[:, i]  ==  h @ S
    # (kept in f32 so the high-frequency phases stay accurate).
    si = jnp.dot(h, s_ref[...], preferred_element_type=jnp.float32)   # (TN, 24)
    sin_si = jnp.sin(si)
    cos_si = jnp.cos(si)      # == sin(si + pi/2), matching the torch reference

    def swish(a):
        return jax.nn.sigmoid(a) * a

    bf = jnp.bfloat16
    # Layer 1: enc = [h, sin(si), cos(si)] handled as three dots against the
    # corresponding row blocks of w1 (no in-kernel concatenation).
    a = (jnp.dot(h.astype(bf), w1h_ref[...], preferred_element_type=jnp.float32)
         + jnp.dot(sin_si.astype(bf), w1s_ref[...],
                   preferred_element_type=jnp.float32)
         + jnp.dot(cos_si.astype(bf), w1c_ref[...],
                   preferred_element_type=jnp.float32)
         + b1_ref[...])
    a = swish(a)
    a = swish(jnp.dot(a.astype(bf), w2_ref[...],
                      preferred_element_type=jnp.float32) + b2_ref[...])
    a = swish(jnp.dot(a.astype(bf), w3_ref[...],
                      preferred_element_type=jnp.float32) + b3_ref[...])
    a = swish(jnp.dot(a.astype(bf), w4_ref[...],
                      preferred_element_type=jnp.float32) + b4_ref[...])
    out = jnp.dot(a.astype(bf), w5_ref[...],
                  preferred_element_type=jnp.float32) + b5_ref[...]
    o_ref[...] = out.astype(o_ref.dtype)                      # (TN, 128) f32


# ---------------------------------------------------------------------------
# Wrapper: concat x/t, build constants, tile the batch, call pallas_call
# ---------------------------------------------------------------------------
def _fourier_scale_matrix():
    # S[j, i*NUM_FREQ + f] = 2*pi*2^f if j == i else 0    (shape (4, 24))
    s = np.zeros((FF_IN_DIM, SI_DIM), np.float32)
    for i in range(FF_IN_DIM):
        for f in range(NUM_FREQ):
            s[i, i * NUM_FREQ + f] = 2.0 * np.pi * (2.0 ** f)
    return jnp.asarray(s)


@jax.jit
def mlp_forward(x, t, params):
    # MLP.forward: t.reshape(-1,1).expand(N,1); h = cat([x, t], dim=1)
    n = x.shape[0]
    x = x.astype(jnp.float32)
    t = t.astype(jnp.float32).reshape(-1, 1)
    t = jnp.broadcast_to(t, (n, 1))
    h = jnp.concatenate([x, t], axis=1)                       # (N, 4)

    # Batch tiling: full 8-row-aligned blocks, tile capped at TILE_ROWS
    # (weights are < 1 MiB in bf16, so this fits the 16 MiB v5e scoped VMEM
    #  and leaves plenty of headroom on v6e / v7x).
    tile = min(TILE_ROWS, -(-n // 8) * 8)
    n_pad = -(-n // tile) * tile
    if n_pad != n:
        h = jnp.pad(h, ((0, n_pad - n), (0, 0)))
    grid = (n_pad // tile,)

    bf = jnp.bfloat16
    w1 = params["w1"]
    w1h = w1[:FF_IN_DIM].astype(bf)                           # rows for h
    w1s = w1[FF_IN_DIM:FF_IN_DIM + SI_DIM].astype(bf)         # rows for sin(si)
    w1c = w1[FF_IN_DIM + SI_DIM:].astype(bf)                  # rows for cos(si)
    b1 = params["b1"]
    w2, b2 = params["w2"].astype(bf), params["b2"]
    w3, b3 = params["w3"].astype(bf), params["b3"]
    w4, b4 = params["w4"].astype(bf), params["b4"]
    w5 = jnp.pad(params["w5"], ((0, 0), (0, OUT_PAD - CHANNELS))).astype(bf)
    b5 = jnp.pad(params["b5"], ((0, 0), (0, OUT_PAD - CHANNELS)))
    s_mat = _fourier_scale_matrix()

    def row_spec(shape):            # streams with the batch grid
        return pl.BlockSpec(shape, lambda i: (i, 0))

    def const_spec(shape):          # constant block index -> stays resident
        return pl.BlockSpec(shape, lambda i: (0, 0))

    in_specs = [
        row_spec((tile, FF_IN_DIM)),
        const_spec((FF_IN_DIM, SI_DIM)),
        const_spec((FF_IN_DIM, HIDDEN)),
        const_spec((SI_DIM, HIDDEN)),
        const_spec((SI_DIM, HIDDEN)),
        const_spec((1, HIDDEN)),
        const_spec((HIDDEN, HIDDEN)), const_spec((1, HIDDEN)),
        const_spec((HIDDEN, HIDDEN)), const_spec((1, HIDDEN)),
        const_spec((HIDDEN, HIDDEN)), const_spec((1, HIDDEN)),
        const_spec((HIDDEN, OUT_PAD)), const_spec((1, OUT_PAD)),
    ]
    out_specs = row_spec((tile, OUT_PAD))

    flops = 2 * n_pad * (FF_IN_DIM * SI_DIM + FOURIER_DIM * HIDDEN
                         + 3 * HIDDEN * HIDDEN + HIDDEN * OUT_PAD)
    transcendentals = n_pad * (2 * SI_DIM + 4 * HIDDEN)
    weight_bytes = 2 * (FOURIER_DIM * HIDDEN + 3 * HIDDEN * HIDDEN
                        + HIDDEN * OUT_PAD) + 4 * (4 * HIDDEN + OUT_PAD)
    bytes_accessed = weight_bytes + 4 * n_pad * (FF_IN_DIM + OUT_PAD)

    out = pl.pallas_call(
        mlp_kernel,
        out_shape=jax.ShapeDtypeStruct((n_pad, OUT_PAD), jnp.float32),
        grid=grid,
        in_specs=in_specs,
        out_specs=out_specs,
        compiler_params=pltpu.CompilerParams(
            dimension_semantics=("parallel",)),
        cost_estimate=pl.CostEstimate(
            flops=flops, transcendentals=transcendentals,
            bytes_accessed=bytes_accessed),
    )(h, s_mat, w1h, w1s, w1c, b1, w2, b2, w3, b3, w4, b4, w5, b5)

    # output.reshape(*x.size()) -> (N, CHANNELS)
    return out[:n, :CHANNELS]


# ---------------------------------------------------------------------------
# Deterministic parameter init (PyTorch nn.Linear-style uniform bounds),
# weights stored as (in, out) in float32 (bf16 cast happens in the wrapper).
# ---------------------------------------------------------------------------
def init_params(key):
    dims = [(FOURIER_DIM, HIDDEN), (HIDDEN, HIDDEN), (HIDDEN, HIDDEN),
            (HIDDEN, HIDDEN), (HIDDEN, CHANNELS)]
    params = {}
    for i, (fan_in, fan_out) in enumerate(dims, start=1):
        key, kw, kb = jax.random.split(key, 3)
        bound = 1.0 / np.sqrt(fan_in)
        params[f"w{i}"] = jax.random.uniform(
            kw, (fan_in, fan_out), jnp.float32, -bound, bound)
        params[f"b{i}"] = jax.random.uniform(
            kb, (1, fan_out), jnp.float32, -bound, bound)
    return params


# ---------------------------------------------------------------------------
# Pure-JAX f32 reference (mirrors the PyTorch forward) for correctness check
# ---------------------------------------------------------------------------
def reference_forward(x, t, params):
    n = x.shape[0]
    t = t.astype(jnp.float32).reshape(-1, 1)
    t = jnp.broadcast_to(t, (n, 1))
    h = jnp.concatenate([x.astype(jnp.float32), t], axis=1)
    freqs = 2.0 ** jnp.linspace(0.0, NUM_FREQ - 1.0, NUM_FREQ)
    si = (2.0 * jnp.pi * h)[..., None] * freqs
    si = si.reshape(si.shape[0], -1)
    enc = jnp.sin(jnp.concatenate([si, si + jnp.pi / 2.0], axis=-1))
    enc = jnp.concatenate([h, enc], axis=-1)

    def swish(a):
        return jax.nn.sigmoid(a) * a

    a = swish(enc @ params["w1"] + params["b1"])
    a = swish(a @ params["w2"] + params["b2"])
    a = swish(a @ params["w3"] + params["b3"])
    a = swish(a @ params["w4"] + params["b4"])
    return a @ params["w5"] + params["b5"]


if __name__ == "__main__":
    key = jax.random.PRNGKey(0)
    kp, kx, kt = jax.random.split(key, 3)

    N = 8                                   # small batch of points
    params = init_params(kp)
    x = jax.random.normal(kx, (N, CHANNELS), jnp.float32)
    t = jax.random.uniform(kt, (N,), jnp.float32)

    out = mlp_forward(x, t, params)
    out = jax.block_until_ready(out)

    ref = reference_forward(x, t, params)
    # bf16 MXU operands (f32 accumulate) -> validate with a relaxed tolerance.
    np.testing.assert_allclose(np.asarray(out), np.asarray(ref),
                               rtol=5e-2, atol=5e-2)
    assert out.shape == (N, CHANNELS) and out.dtype == jnp.float32
    print("KERNEL_OK")
</pallas_src>

<mosaic_0001>
module attributes {stable_mosaic.version = 11 : i64} {
  func.func @mlp_kernel(%arg0: i32, %arg1: memref<8x4xf32, #tpu.memory_space<vmem>>, %arg2: memref<4x24xf32, #tpu.memory_space<vmem>>, %arg3: memref<4x256xbf16, #tpu.memory_space<vmem>>, %arg4: memref<24x256xbf16, #tpu.memory_space<vmem>>, %arg5: memref<24x256xbf16, #tpu.memory_space<vmem>>, %arg6: memref<1x256xf32, #tpu.memory_space<vmem>>, %arg7: memref<256x256xbf16, #tpu.memory_space<vmem>>, %arg8: memref<1x256xf32, #tpu.memory_space<vmem>>, %arg9: memref<256x256xbf16, #tpu.memory_space<vmem>>, %arg10: memref<1x256xf32, #tpu.memory_space<vmem>>, %arg11: memref<256x256xbf16, #tpu.memory_space<vmem>>, %arg12: memref<1x256xf32, #tpu.memory_space<vmem>>, %arg13: memref<256x128xbf16, #tpu.memory_space<vmem>>, %arg14: memref<1x128xf32, #tpu.memory_space<vmem>>, %arg15: memref<8x128xf32, #tpu.memory_space<vmem>>) attributes {dimension_semantics = [#tpu.dimension_semantics<parallel>], iteration_bounds = array<i64: 1>, scalar_prefetch = 0 : i64, scratch_operands = 0 : i64, tpu.core_type = #tpu.core_type<tc>, window_params = [{transform_indices = @transform_0, window_bounds = array<i64: 8, 4>}, {pipeline_mode = #tpu.pipeline_mode<synchronous>, transform_indices = @transform_1, window_bounds = array<i64: 4, 24>}, {pipeline_mode = #tpu.pipeline_mode<synchronous>, transform_indices = @transform_2, window_bounds = array<i64: 4, 256>}, {pipeline_mode = #tpu.pipeline_mode<synchronous>, transform_indices = @transform_3, window_bounds = array<i64: 24, 256>}, {pipeline_mode = #tpu.pipeline_mode<synchronous>, transform_indices = @transform_4, window_bounds = array<i64: 24, 256>}, {pipeline_mode = #tpu.pipeline_mode<synchronous>, transform_indices = @transform_5, window_bounds = array<i64: 1, 256>}, {pipeline_mode = #tpu.pipeline_mode<synchronous>, transform_indices = @transform_6, window_bounds = array<i64: 256, 256>}, {pipeline_mode = #tpu.pipeline_mode<synchronous>, transform_indices = @transform_7, window_bounds = array<i64: 1, 256>}, {pipeline_mode = #tpu.pipeline_mode<synchronous>, transform_indices = @transform_8, window_bounds = array<i64: 256, 256>}, {pipeline_mode = #tpu.pipeline_mode<synchronous>, transform_indices = @transform_9, window_bounds = array<i64: 1, 256>}, {pipeline_mode = #tpu.pipeline_mode<synchronous>, transform_indices = @transform_10, window_bounds = array<i64: 256, 256>}, {pipeline_mode = #tpu.pipeline_mode<synchronous>, transform_indices = @transform_11, window_bounds = array<i64: 1, 256>}, {pipeline_mode = #tpu.pipeline_mode<synchronous>, transform_indices = @transform_12, window_bounds = array<i64: 256, 128>}, {pipeline_mode = #tpu.pipeline_mode<synchronous>, transform_indices = @transform_13, window_bounds = array<i64: 1, 128>}, {transform_indices = @transform_14, window_bounds = array<i64: 8, 128>}]} {
    %c0 = arith.constant 0 : index
    %c0_0 = arith.constant 0 : index
    %0 = vector.load %arg1[%c0, %c0_0] : memref<8x4xf32, #tpu.memory_space<vmem>>, vector<8x4xf32>
    %c0_1 = arith.constant 0 : index
    %c0_2 = arith.constant 0 : index
    %1 = vector.load %arg2[%c0_1, %c0_2] : memref<4x24xf32, #tpu.memory_space<vmem>>, vector<4x24xf32>
    %cst = arith.constant dense<0.000000e+00> : vector<8x24xf32>
    %2 = tpu.matmul %0, %1, %cst {dimension_numbers = #tpu.dot_dimension_numbers<[1], [0], [0], [1], [0, 0, 1, 1], [], []>} : vector<8x4xf32>, vector<4x24xf32>, vector<8x24xf32> -> vector<8x24xf32>
    %3 = math.sin %2 : vector<8x24xf32>
    %4 = math.cos %2 : vector<8x24xf32>
    %5 = arith.truncf %0 : vector<8x4xf32> to vector<8x4xbf16>
    %c0_3 = arith.constant 0 : index
    %c0_4 = arith.constant 0 : index
    %6 = vector.load %arg3[%c0_3, %c0_4] : memref<4x256xbf16, #tpu.memory_space<vmem>>, vector<4x256xbf16>
    %cst_5 = arith.constant dense<0.000000e+00> : vector<8x256xf32>
    %7 = tpu.matmul %5, %6, %cst_5 {dimension_numbers = #tpu.dot_dimension_numbers<[1], [0], [0], [1], [0, 0, 1, 1], [], []>} : vector<8x4xbf16>, vector<4x256xbf16>, vector<8x256xf32> -> vector<8x256xf32>
    %8 = arith.truncf %3 : vector<8x24xf32> to vector<8x24xbf16>
    %c0_6 = arith.constant 0 : index
    %c0_7 = arith.constant 0 : index
    %9 = vector.load %arg4[%c0_6, %c0_7] : memref<24x256xbf16, #tpu.memory_space<vmem>>, vector<24x256xbf16>
    %cst_8 = arith.constant dense<0.000000e+00> : vector<8x256xf32>
    %10 = tpu.matmul %8, %9, %cst_8 {dimension_numbers = #tpu.dot_dimension_numbers<[1], [0], [0], [1], [0, 0, 1, 1], [], []>} : vector<8x24xbf16>, vector<24x256xbf16>, vector<8x256xf32> -> vector<8x256xf32>
    %11 = arith.addf %7, %10 : vector<8x256xf32>
    %12 = arith.truncf %4 : vector<8x24xf32> to vector<8x24xbf16>
    %c0_9 = arith.constant 0 : index
    %c0_10 = arith.constant 0 : index
    %13 = vector.load %arg5[%c0_9, %c0_10] : memref<24x256xbf16, #tpu.memory_space<vmem>>, vector<24x256xbf16>
    %cst_11 = arith.constant dense<0.000000e+00> : vector<8x256xf32>
    %14 = tpu.matmul %12, %13, %cst_11 {dimension_numbers = #tpu.dot_dimension_numbers<[1], [0], [0], [1], [0, 0, 1, 1], [], []>} : vector<8x24xbf16>, vector<24x256xbf16>, vector<8x256xf32> -> vector<8x256xf32>
    %15 = arith.addf %11, %14 : vector<8x256xf32>
    %c0_12 = arith.constant 0 : index
    %c0_13 = arith.constant 0 : index
    %16 = vector.load %arg6[%c0_12, %c0_13] : memref<1x256xf32, #tpu.memory_space<vmem>>, vector<1x256xf32>
    %17 = vector.broadcast %16 : vector<1x256xf32> to vector<8x256xf32>
    %18 = arith.addf %15, %17 : vector<8x256xf32>
    %19 = arith.negf %18 : vector<8x256xf32>
    %20 = math.exp %19 : vector<8x256xf32>
    %cst_14 = arith.constant 1.000000e+00 : f32
    %21 = vector.broadcast %cst_14 : f32 to vector<8x256xf32>
    %22 = arith.addf %21, %20 : vector<8x256xf32>
    %23 = arith.divf %21, %22 : vector<8x256xf32>
    %24 = arith.mulf %23, %18 : vector<8x256xf32>
    %25 = arith.truncf %24 : vector<8x256xf32> to vector<8x256xbf16>
    %c0_15 = arith.constant 0 : index
    %c0_16 = arith.constant 0 : index
    %26 = vector.load %arg7[%c0_15, %c0_16] : memref<256x256xbf16, #tpu.memory_space<vmem>>, vector<256x256xbf16>
    %cst_17 = arith.constant dense<0.000000e+00> : vector<8x256xf32>
    %27 = tpu.matmul %25, %26, %cst_17 {dimension_numbers = #tpu.dot_dimension_numbers<[1], [0], [0], [1], [0, 0, 1, 1], [], []>} : vector<8x256xbf16>, vector<256x256xbf16>, vector<8x256xf32> -> vector<8x256xf32>
    %c0_18 = arith.constant 0 : index
    %c0_19 = arith.constant 0 : index
    %28 = vector.load %arg8[%c0_18, %c0_19] : memref<1x256xf32, #tpu.memory_space<vmem>>, vector<1x256xf32>
    %29 = vector.broadcast %28 : vector<1x256xf32> to vector<8x256xf32>
    %30 = arith.addf %27, %29 : vector<8x256xf32>
    %31 = arith.negf %30 : vector<8x256xf32>
    %32 = math.exp %31 : vector<8x256xf32>
    %cst_20 = arith.constant 1.000000e+00 : f32
    %33 = vector.broadcast %cst_20 : f32 to vector<8x256xf32>
    %34 = arith.addf %33, %32 : vector<8x256xf32>
    %35 = arith.divf %33, %34 : vector<8x256xf32>
    %36 = arith.mulf %35, %30 : vector<8x256xf32>
    %37 = arith.truncf %36 : vector<8x256xf32> to vector<8x256xbf16>
    %c0_21 = arith.constant 0 : index
    %c0_22 = arith.constant 0 : index
    %38 = vector.load %arg9[%c0_21, %c0_22] : memref<256x256xbf16, #tpu.memory_space<vmem>>, vector<256x256xbf16>
    %cst_23 = arith.constant dense<0.000000e+00> : vector<8x256xf32>
    %39 = tpu.matmul %37, %38, %cst_23 {dimension_numbers = #tpu.dot_dimension_numbers<[1], [0], [0], [1], [0, 0, 1, 1], [], []>} : vector<8x256xbf16>, vector<256x256xbf16>, vector<8x256xf32> -> vector<8x256xf32>
    %c0_24 = arith.constant 0 : index
    %c0_25 = arith.constant 0 : index
    %40 = vector.load %arg10[%c0_24, %c0_25] : memref<1x256xf32, #tpu.memory_space<vmem>>, vector<1x256xf32>
    %41 = vector.broadcast %40 : vector<1x256xf32> to vector<8x256xf32>
    %42 = arith.addf %39, %41 : vector<8x256xf32>
    %43 = arith.negf %42 : vector<8x256xf32>
    %44 = math.exp %43 : vector<8x256xf32>
    %cst_26 = arith.constant 1.000000e+00 : f32
    %45 = vector.broadcast %cst_26 : f32 to vector<8x256xf32>
    %46 = arith.addf %45, %44 : vector<8x256xf32>
    %47 = arith.divf %45, %46 : vector<8x256xf32>
    %48 = arith.mulf %47, %42 : vector<8x256xf32>
    %49 = arith.truncf %48 : vector<8x256xf32> to vector<8x256xbf16>
    %c0_27 = arith.constant 0 : index
    %c0_28 = arith.constant 0 : index
    %50 = vector.load %arg11[%c0_27, %c0_28] : memref<256x256xbf16, #tpu.memory_space<vmem>>, vector<256x256xbf16>
    %cst_29 = arith.constant dense<0.000000e+00> : vector<8x256xf32>
    %51 = tpu.matmul %49, %50, %cst_29 {dimension_numbers = #tpu.dot_dimension_numbers<[1], [0], [0], [1], [0, 0, 1, 1], [], []>} : vector<8x256xbf16>, vector<256x256xbf16>, vector<8x256xf32> -> vector<8x256xf32>
    %c0_30 = arith.constant 0 : index
    %c0_31 = arith.constant 0 : index
    %52 = vector.load %arg12[%c0_30, %c0_31] : memref<1x256xf32, #tpu.memory_space<vmem>>, vector<1x256xf32>
    %53 = vector.broadcast %52 : vector<1x256xf32> to vector<8x256xf32>
    %54 = arith.addf %51, %53 : vector<8x256xf32>
    %55 = arith.negf %54 : vector<8x256xf32>
    %56 = math.exp %55 : vector<8x256xf32>
    %cst_32 = arith.constant 1.000000e+00 : f32
    %57 = vector.broadcast %cst_32 : f32 to vector<8x256xf32>
    %58 = arith.addf %57, %56 : vector<8x256xf32>
    %59 = arith.divf %57, %58 : vector<8x256xf32>
    %60 = arith.mulf %59, %54 : vector<8x256xf32>
    %61 = arith.truncf %60 : vector<8x256xf32> to vector<8x256xbf16>
    %c0_33 = arith.constant 0 : index
    %c0_34 = arith.constant 0 : index
    %62 = vector.load %arg13[%c0_33, %c0_34] : memref<256x128xbf16, #tpu.memory_space<vmem>>, vector<256x128xbf16>
    %cst_35 = arith.constant dense<0.000000e+00> : vector<8x128xf32>
    %63 = tpu.matmul %61, %62, %cst_35 {dimension_numbers = #tpu.dot_dimension_numbers<[1], [0], [0], [1], [0, 0, 1, 1], [], []>} : vector<8x256xbf16>, vector<256x128xbf16>, vector<8x128xf32> -> vector<8x128xf32>
    %c0_36 = arith.constant 0 : index
    %c0_37 = arith.constant 0 : index
    %64 = vector.load %arg14[%c0_36, %c0_37] : memref<1x128xf32, #tpu.memory_space<vmem>>, vector<1x128xf32>
    %65 = vector.broadcast %64 : vector<1x128xf32> to vector<8x128xf32>
    %66 = arith.addf %63, %65 : vector<8x128xf32>
    %c0_38 = arith.constant 0 : index
    %c0_39 = arith.constant 0 : index
    %67 = vector.load %arg15[%c0_38, %c0_39] : memref<8x128xf32, #tpu.memory_space<vmem>>, vector<8x128xf32>
    tpu.vector_store %arg15[%c0_38, %c0_39], %66 {strides = array<i32>} : memref<8x128xf32, #tpu.memory_space<vmem>>, vector<8x128xf32>,
    return
  }
  func.func @transform_0(%arg0: i32) -> (i32, i32) {
    %c0_i32 = arith.constant 0 : i32
    %c0_i32_0 = arith.constant 0 : i32
    return %arg0, %c0_i32 : i32, i32
  }
  func.func @transform_1(%arg0: i32) -> (i32, i32) {
    %c0_i32 = arith.constant 0 : i32
    %c0_i32_0 = arith.constant 0 : i32
    %c0_i32_1 = arith.constant 0 : i32
    return %c0_i32, %c0_i32_0 : i32, i32
  }
  func.func @transform_2(%arg0: i32) -> (i32, i32) {
    %c0_i32 = arith.constant 0 : i32
    %c0_i32_0 = arith.constant 0 : i32
    %c0_i32_1 = arith.constant 0 : i32
    return %c0_i32, %c0_i32_0 : i32, i32
  }
  func.func @transform_3(%arg0: i32) -> (i32, i32) {
    %c0_i32 = arith.constant 0 : i32
    %c0_i32_0 = arith.constant 0 : i32
    %c0_i32_1 = arith.constant 0 : i32
    return %c0_i32, %c0_i32_0 : i32, i32
  }
  func.func @transform_4(%arg0: i32) -> (i32, i32) {
    %c0_i32 = arith.constant 0 : i32
    %c0_i32_0 = arith.constant 0 : i32
    %c0_i32_1 = arith.constant 0 : i32
    return %c0_i32, %c0_i32_0 : i32, i32
  }
  func.func @transform_5(%arg0: i32) -> (i32, i32) {
    %c0_i32 = arith.constant 0 : i32
    %c0_i32_0 = arith.constant 0 : i32
    %c0_i32_1 = arith.constant 0 : i32
    return %c0_i32, %c0_i32_0 : i32, i32
  }
  func.func @transform_6(%arg0: i32) -> (i32, i32) {
    %c0_i32 = arith.constant 0 : i32
    %c0_i32_0 = arith.constant 0 : i32
    %c0_i32_1 = arith.constant 0 : i32
    return %c0_i32, %c0_i32_0 : i32, i32
  }
  func.func @transform_7(%arg0: i32) -> (i32, i32) {
    %c0_i32 = arith.constant 0 : i32
    %c0_i32_0 = arith.constant 0 : i32
    %c0_i32_1 = arith.constant 0 : i32
    return %c0_i32, %c0_i32_0 : i32, i32
  }
  func.func @transform_8(%arg0: i32) -> (i32, i32) {
    %c0_i32 = arith.constant 0 : i32
    %c0_i32_0 = arith.constant 0 : i32
    %c0_i32_1 = arith.constant 0 : i32
    return %c0_i32, %c0_i32_0 : i32, i32
  }
  func.func @transform_9(%arg0: i32) -> (i32, i32) {
    %c0_i32 = arith.constant 0 : i32
    %c0_i32_0 = arith.constant 0 : i32
    %c0_i32_1 = arith.constant 0 : i32
    return %c0_i32, %c0_i32_0 : i32, i32
  }
  func.func @transform_10(%arg0: i32) -> (i32, i32) {
    %c0_i32 = arith.constant 0 : i32
    %c0_i32_0 = arith.constant 0 : i32
    %c0_i32_1 = arith.constant 0 : i32
    return %c0_i32, %c0_i32_0 : i32, i32
  }
  func.func @transform_11(%arg0: i32) -> (i32, i32) {
    %c0_i32 = arith.constant 0 : i32
    %c0_i32_0 = arith.constant 0 : i32
    %c0_i32_1 = arith.constant 0 : i32
    return %c0_i32, %c0_i32_0 : i32, i32
  }
  func.func @transform_12(%arg0: i32) -> (i32, i32) {
    %c0_i32 = arith.constant 0 : i32
    %c0_i32_0 = arith.constant 0 : i32
    %c0_i32_1 = arith.constant 0 : i32
    return %c0_i32, %c0_i32_0 : i32, i32
  }
  func.func @transform_13(%arg0: i32) -> (i32, i32) {
    %c0_i32 = arith.constant 0 : i32
    %c0_i32_0 = arith.constant 0 : i32
    %c0_i32_1 = arith.constant 0 : i32
    return %c0_i32, %c0_i32_0 : i32, i32
  }
  func.func @transform_14(%arg0: i32) -> (i32, i32) {
    %c0_i32 = arith.constant 0 : i32
    %c0_i32_0 = arith.constant 0 : i32
    return %arg0, %c0_i32 : i32, i32
  }
}

</mosaic_0001>

<bundles_post_ra>
// kernel: mlp_forward.1
= control target key start
LH: loop header
LB: loop body
LE: loop exit
PB: predicated region body
PF: predicated region fallthrough
CT: control target
= control target key end

     0   :  { %vm54_vm0 = vcmask 1043456   ;;  %vm50_vm1 = vcmask 31744   ;;  %v1925_v0 = vmov 0.0   ;;  %vm1926_vm2 = vmmov 0   ;;  %s2447_s1 = inlined_call_operand.vmem [shape: f32[4,24], index: 1, kind: input, shape index: {}]   ;;  %s2448_s0 = inlined_call_operand.vmem [shape: f32[8,4], index: 0, kind: input, shape index: {}]   ;;  %s2449_s3 = inlined_call_operand.vmem [shape: bf16[24,256], index: 3, kind: input, shape index: {}]   ;;  %s2450_s2 = inlined_call_operand.vmem [shape: bf16[4,256], index: 2, kind: input, shape index: {}]   ;;  %s2451_s4 = inlined_call_operand.vmem [shape: bf16[24,256], index: 4, kind: input, shape index: {}]   ;;  %s2452_s6 = inlined_call_operand.vmem [shape: bf16[256,256], index: 6, kind: input, shape index: {}]   ;;  %s2453_s8 = inlined_call_operand.vmem [shape: bf16[256,256], index: 8, kind: input, shape index: {}]   ;;  %s2454_s5 = inlined_call_operand.vmem [shape: f32[1,256], index: 5, kind: input, shape index: {}]   ;;  %s2455_s10 = inlined_call_operand.vmem [shape: bf16[256,256], index: 10, kind: input, shape index: {}]   ;;  %s2456_s7 = inlined_call_operand.vmem [shape: f32[1,256], index: 7, kind: input, shape index: {}]   ;;  %s2457_s9 = inlined_call_operand.vmem [shape: f32[1,256], index: 9, kind: input, shape index: {}]   ;;  %s2458_s12 = inlined_call_operand.vmem [shape: bf16[256,128], index: 12, kind: input, shape index: {}]   ;;  %s2459_s11 = inlined_call_operand.vmem [shape: f32[1,256], index: 11, kind: input, shape index: {}]   ;;  %s2460_s13 = inlined_call_operand.vmem [shape: f32[1,128], index: 13, kind: input, shape index: {}]   ;;  %s2461_s14 = inlined_call_operand.vmem [shape: f32[8,128], index: 14, kind: output, shape index: {}]  }
   0x1   :  { %1701 = vmatprep.subr.mxu0 %v1925_v0  ;;  %v49_v1 = vld [vmem:[%s2447_s1] sm:$0xf]  ;;  %1703 = vmatprep.mubr.msk.f32.mxu0 %vm1926_vm2, %v1925_v0  ;;  %v1721_v3 = vld [vmem:[%s2449_s3 + $0x4] ss:$8 sps:$4 sm:$0xff]   ;;  %v340_v5 = vld [vmem:[%s2449_s3 + $0x10] sm:$0xff]  ;;  %vm419_vm3 = vcmask 1041408  }
   0x2   :  { %v2015_v2 = vld [vmem:[%s2448_s0] sm:$0xff]  ;;  %1702 = vmatpush3.msk.msra.mxu0 %vm54_vm0, %v49_v1  ;;  %v1544_v6 = vcombine.high %v340_v5, %v340_v5  ;;  %v1543_v7 = vcombine.low %v340_v5, %v340_v5  ;;  %v1927_v9 = vmov 0   ;;  %v1732_v15 = vld [vmem:[%s2452_s6 + $0x14] ss:$8 sps:$4 sm:$0xff]   ;;  %v1734_v16 = vld [vmem:[%s2452_s6 + $0x10] ss:$8 sps:$4 sm:$0xff]  }
   0x3   :  { %1704 = vmatmul.mubr.msk.f32.vlgmr.msra.gmra.mrb[0].mxu0 %vm50_vm1, %v2015_v2  ;;  %v1719_v4 = vld [vmem:[%s2449_s3] ss:$8 sps:$4 sm:$0xff]   ;;  %366 = vmatprep.subr.bf16.mxu0 %v1721_v3  ;;  %v1729_v13 = vld [vmem:[%s2452_s6 + $0x4] ss:$8 sps:$4 sm:$0xff]   ;;  %v1928_v31 = vmov 683565275  }
   0x4   :  { %367 = vmatpush1.bf16.msra.mxu0 %v1719_v4  ;;  %v361_v8 = vsel %vm54_vm0, %v1543_v7, 0  ;;  %398 = vmatprep.mubr.bf16.mxu0 %v1927_v9  ;;  %v1547_v10 = vld.sshfl [vmem:[%s2450_s2] sm:$0x33 pattern:$0x76325410] }
   0x5   :  { %1545 = vmatprep.subr.msk.bf16.mxu0 %vm54_vm0, %v1544_v6  ;;  %v415_v11 = vcombine.high %v1547_v10, %v1547_v10  ;;  %v2035_v12 = vsel %vm419_vm3, %v1547_v10, 0  ;;  %v1731_v14 = vld [vmem:[%s2452_s6] ss:$8 sps:$4 sm:$0xff]   ;;  %772 = vmatprep.subr.bf16.mxu1 %v1729_v13  ;;  %v1735_v17 = vld [vmem:[%s2452_s6 + $0x24] ss:$8 sps:$4 sm:$0xff]  }
   0x6   :  { %773 = vmatpush1.bf16.msra.mxu1 %v1731_v14  ;;  %v1737_v18 = vld [vmem:[%s2452_s6 + $0x20] ss:$8 sps:$4 sm:$0xff]   ;;  %v1929_v33 = vmov 2475754826   ;;  %v1930_v36 = vmov 2131351028  }
   0x7   :  { %774 = vmatprep.subr.bf16.mxu1 %v1732_v15  ;;  %v1931_v39 = vmov 2102212464   ;;  %v1932_v42 = vmov 920167782   ;;  %v1933_v45 = vmov 1326507024  }
   0x8   :  { %369 = vmatpush1.bf16.msra.mxu0 %v361_v8 }
   0x9   :  { %1548 = vmatprep.subr.msk.bf16.mxu0 %vm419_vm3, %v415_v11  ;;  %vm356_vm3 = vcmask 195584  }
   0xa   :  { %775 = vmatpush1.bf16.msra.mxu1 %v1734_v16 }
   0xb   :  { %776 = vmatprep.subr.bf16.mxu1 %v1735_v17 }
   0xe   :  { %777 = vmatpush1.bf16.msra.mxu1 %v1737_v18 }
  0xd6   :  { %v2055_v19 = vpop.f32.mrb[0].mxu0 }
  0xd7   :  { %v131_v20 = vand.u32 2139095040, %v2055_v19  ;;  %v1705_v21 = vpop.f32.mrb[1].mxu0  ;;  %v128_v25 = vand.u32 2147483647, %v2055_v19  ;;  %vm130_vm11 = vcmp.lt.s32.totalorder %v2055_v19, 0  ;;  %vm220_vm2 = vweird.f32 %v2055_v19 }
  0xd9   :  { %v132_v22 = vshrl.u32 %v131_v20, 23  ;;  %v135_v28 = vand.u32 8388607, %v128_v25  ;;  %vm129_vm12 = vcmp.le.f32.partialorder %v128_v25, 0.7853982 }
  0xdb   :  { %v1533_v23 = vadd.s32 4294967169, %v132_v22  ;;  %v136_v47 = vor.u32 8388608, %v135_v28 }
  0xdd   :  { %v138_v24 = vadd.s32 1, %v1533_v23  ;;  %v176_v61 = vshll.u32 %v136_v47, 8 }
  0xdf   :  { %vm139_vm4 = vcmp.gt.s32.totalorder %v138_v24, 0 }
  0xe0   :  { %v140_v26 = vsel %vm139_vm4, %v138_v24, 0 }
  0xe1   :  { %v142_v27 = vand.u32 31, %v140_v26  ;;  %v141_v30 = vshrl.u32 %v140_v26, 5 }
  0xe3   :  { %v143_v29 = vsub.s32 32, %v142_v27  ;;  %v145_v32 = vshll.u32 %v1928_v31, %v142_v27  ;;  %v148_v34 = vshll.u32 %v1929_v33, %v142_v27  ;;  %v151_v38 = vshll.u32 %v1930_v36, %v142_v27 }
  0xe4   :  { %v154_v41 = vshll.u32 %v1931_v39, %v142_v27  ;;  %v157_v44 = vshll.u32 %v1932_v42, %v142_v27  ;;  %vm160_vm5 = vcmp.lt.s32.totalorder %v141_v30, 1  ;;  %vm163_vm6 = vcmp.lt.s32.totalorder %v141_v30, 4 }
  0xe5   :  { %v146_v35 = vshrl.u32 %v1929_v33, %v143_v29  ;;  %v149_v37 = vshrl.u32 %v1930_v36, %v143_v29  ;;  %v152_v40 = vshrl.u32 %v1931_v39, %v143_v29  ;;  %v155_v43 = vshrl.u32 %v1932_v42, %v143_v29 }
  0xe6   :  { %v158_v46 = vshrl.u32 %v1933_v45, %v143_v29  ;;  %v144_v56 = vshrl.u32 %v1928_v31, %v143_v29  ;;  %vm162_vm7 = vcmp.lt.s32.totalorder %v141_v30, 3  ;;  %vm161_vm8 = vcmp.lt.s32.totalorder %v141_v30, 2 }
  0xe7   :  { %v147_v48 = vor.u32 %v146_v35, %v145_v32  ;;  %v150_v49 = vor.u32 %v149_v37, %v148_v34  ;;  %v153_v50 = vor.u32 %v152_v40, %v151_v38  ;;  %v156_v51 = vor.u32 %v155_v43, %v154_v41 }
  0xe8   :  { %v159_v52 = vor.u32 %v158_v46, %v157_v44 }
  0xe9   :  { %v165_v53 = vsel %vm163_vm6, %v153_v50, 2102212464  ;;  %v168_v54 = vsel %vm160_vm5, %v147_v48, %v150_v49  ;;  %v172_v55 = vsel %vm160_vm5, %v150_v49, %v153_v50  ;;  %v169_v57 = vsel %vm163_vm6, %v156_v51, 920167782 }
  0xea   :  { %v173_v58 = vsel %vm163_vm6, %v159_v52, 1326507024  ;;  %v170_v59 = vsel %vm162_vm7, %v153_v50, %v169_v57  ;;  %v164_v62 = vsel %vm160_vm5, %v144_v56, %v147_v48  ;;  %v166_v63 = vsel %vm162_vm7, %v150_v49, %v165_v53  ;;  %v1726_v53 = vld [vmem:[%s2451_s4 + $0x4] ss:$8 sps:$4 sm:$0xff]  }
  0xeb   :  { %v174_v60 = vsel %vm162_vm7, %v156_v51, %v173_v58  ;;  %v171_v0 = vsel %vm161_vm8, %v168_v54, %v170_v59  ;;  %v167_v7 = vsel %vm161_vm8, %v164_v62, %v166_v63  ;;  %v335_v56 = vpack.c.bf16 %v2015_v2, %v2015_v2  ;;  %v1724_v59 = vld [vmem:[%s2451_s4] ss:$8 sps:$4 sm:$0xff]  }
  0xec   :  { %v175_v1 = vsel %vm161_vm8, %v172_v55, %v174_v60  ;;  %v2064_v5 = vmul.u32.u64.low %v176_v61, %v171_v0  ;;  %v2065_v6 = vmul.u32.u64.high %v176_v61, %v171_v0, %v2064_v5  ;;  %v183_v10 = vmul.u32 %v176_v61, %v167_v7  ;;  %v470_v55 = vld [vmem:[%s2451_s4 + $0x10] sm:$0xff] }
  0xed   :  { %v2061_v3 = vmul.u32.u64.low %v176_v61, %v175_v1  ;;  %v2062_v4 = vmul.u32.u64.high %v176_v61, %v175_v1, %v2061_v3  ;;  %v1553_v60 = vcombine.high %v470_v55, %v470_v55  ;;  %v1738_v0 = vld [vmem:[%s2452_s6 + $0x34] ss:$8 sps:$4 sm:$0xff]   ;;  %v1740_v1 = vld [vmem:[%s2452_s6 + $0x30] ss:$8 sps:$4 sm:$0xff]  }
  0xee   :  { %v186_v8 = vadd.s32 1, %v2065_v6  ;;  %778 = vmatprep.subr.bf16.mxu1 %v1738_v0  ;;  %v1744_v3 = vld [vmem:[%s2452_s6 + $0x54] ss:$8 sps:$4 sm:$0xff]  }
  0xef   :  { %vm185_vm9 = vc.u32 %v2062_v4, %v2064_v5  ;;  %v184_v24 = vadd.s32 %v2064_v5, %v2062_v4  ;;  %779 = vmatpush1.bf16.msra.mxu1 %v1740_v1  ;;  %v1746_v4 = vld [vmem:[%s2452_s6 + $0x50] ss:$8 sps:$4 sm:$0xff]   ;;  %v1747_v5 = vld [vmem:[%s2452_s6 + $0x64] ss:$8 sps:$4 sm:$0xff]   ;;  %v1750_v7 = vld [vmem:[%s2452_s6 + $0x74] ss:$8 sps:$4 sm:$0xff]  }
  0xf0   :  { %v187_v11 = vsel %vm185_vm9, %v186_v8, %v2065_v6  ;;  %v1749_v6 = vld [vmem:[%s2452_s6 + $0x60] ss:$8 sps:$4 sm:$0xff]   ;;  %v1752_v8 = vld [vmem:[%s2452_s6 + $0x70] ss:$8 sps:$4 sm:$0xff]  }
  0xf1   :  { %v188_v13 = vadd.s32 %v187_v11, %v183_v10  ;;  %v1753_v10 = vld [vmem:[%s2452_s6 + $0x84] ss:$8 sps:$4 sm:$0xff]   ;;  %v1755_v11 = vld [vmem:[%s2452_s6 + $0x80] ss:$8 sps:$4 sm:$0xff]  }
  0xf3   :  { %v189_v14 = vadd.s32 536870912, %v188_v13 }
  0xf5   :  { %v190_v15 = vshrl.u32 %v189_v14, 30  ;;  %v1758_v14 = vld [vmem:[%s2452_s6 + $0x90] ss:$8 sps:$4 sm:$0xff]  }
  0xf7   :  { %v191_v16 = vshll.u32 %v190_v15, 30  ;;  %v214_v37 = vsub.s32 4, %v190_v15 }
  0xf9   :  { %v192_v17 = vsub.s32 %v188_v13, %v191_v16  ;;  %v215_v40 = vsel %vm130_vm11, %v214_v37, %v190_v15  ;;  %v1756_v13 = vld [vmem:[%s2452_s6 + $0x94] ss:$8 sps:$4 sm:$0xff]   ;;  %v1759_v15 = vld [vmem:[%s2452_s6 + $0xa4] ss:$8 sps:$4 sm:$0xff]   ;;  %v1761_v16 = vld [vmem:[%s2452_s6 + $0xa0] ss:$8 sps:$4 sm:$0xff]  }
  0xfa   :  { %v217_v42 = vsel %vm129_vm12, 0, %v215_v40  ;;  %v1791_v37 = vld [vmem:[%s2453_s8 + $0x44] ss:$8 sps:$4 sm:$0xff]   ;;  %v1792_v40 = vld [vmem:[%s2453_s8 + $0x50] ss:$8 sps:$4 sm:$0xff]  }
  0xfb   :  { %v194_v18 = vsub.s32 0, %v192_v17  ;;  %v221_v43 = vadd.s32 3, %v217_v42  ;;  %v325_v54 = vand.u32 3, %v217_v42  ;;  %v1795_v42 = vld [vmem:[%s2453_s8 + $0x60] ss:$8 sps:$4 sm:$0xff]  }
  0xfd   :  { %v1534_v20 = vmin.u32 %v194_v18, %v192_v17  ;;  %v222_v44 = vand.u32 3, %v221_v43  ;;  %vm327_vm4 = vcmp.eq.s32.totalorder %v325_v54, 0  ;;  %vm330_vm5 = vcmp.eq.s32.totalorder %v325_v54, 2  ;;  %v1764_v18 = vld [vmem:[%s2452_s6 + $0xb0] ss:$8 sps:$4 sm:$0xff]  }
  0xfe   :  { %vm326_vm6 = vcmp.lt.s32.totalorder %v325_v54, 2  ;;  %v1800_v43 = vld [vmem:[%s2453_s8 + $0x74] ss:$8 sps:$4 sm:$0xff]  }
  0xff   :  { %v196_v21 = vclz %v1534_v20  ;;  %vm227_vm13 = vcmp.eq.s32.totalorder %v222_v44, 2  ;;  %vm224_vm14 = vcmp.eq.s32.totalorder %v222_v44, 0  ;;  %vm223_vm15 = vcmp.lt.s32.totalorder %v222_v44, 2  ;;  %v1765_v20 = vld [vmem:[%s2452_s6 + $0xc4] ss:$8 sps:$4 sm:$0xff]  }
 0x100   :  { %v1798_v44 = vld [vmem:[%s2453_s8 + $0x70] ss:$8 sps:$4 sm:$0xff]  }
 0x101   :  { %v1535_v22 = vadd.s32 4294967294, %v196_v21  ;;  %v1767_v21 = vld [vmem:[%s2452_s6 + $0xc0] ss:$8 sps:$4 sm:$0xff]  }
 0x103   :  { %vm1536_vm10 = vcmp.lt.s32.totalorder %v1535_v22, 0 }
 0x104   :  { %v199_v23 = vsel %vm1536_vm10, 0, %v1535_v22  ;;  %v1768_v22 = vld [vmem:[%s2452_s6 + $0xd4] ss:$8 sps:$4 sm:$0xff]  }
 0x105   :  { %v200_v26 = vsub.s32 32, %v199_v23  ;;  %v204_v27 = vsub.s32 4294967266, %v199_v23  ;;  %v201_v28 = vshll.u32 %v192_v17, %v199_v23  ;;  %v1762_v17 = vld [vmem:[%s2452_s6 + $0xb4] ss:$8 sps:$4 sm:$0xff]   ;;  %v1770_v23 = vld [vmem:[%s2452_s6 + $0xd0] ss:$8 sps:$4 sm:$0xff]  }
 0x107   :  { %v202_v29 = vshrl.u32 %v184_v24, %v200_v26  ;;  %v205_v30 = vadd.s32 127, %v204_v27  ;;  %v1771_v24 = vld [vmem:[%s2452_s6 + $0xe4] ss:$8 sps:$4 sm:$0xff]   ;;  %v1773_v26 = vld [vmem:[%s2452_s6 + $0xe0] ss:$8 sps:$4 sm:$0xff]  }
 0x108   :  { %v1774_v27 = vld [vmem:[%s2452_s6 + $0xf4] ss:$8 sps:$4 sm:$0xff]  }
 0x109   :  { %v203_v31 = vor.u32 %v202_v29, %v201_v28  ;;  %v206_v32 = vshll.u32 %v205_v30, 23  ;;  %v1776_v28 = vld [vmem:[%s2452_s6 + $0xf0] ss:$8 sps:$4 sm:$0xff]   ;;  %v1777_v29 = vld [vmem:[%s2453_s8] ss:$8 sps:$4 sm:$0xff]  }
 0x10a   :  { %v1779_v30 = vld [vmem:[%s2453_s8 + $0x4] ss:$8 sps:$4 sm:$0xff]  }
 0x10b   :  { %v207_v33 = vor.u32 4788187, %v206_v32  ;;  %v210_v35 = vcvt.s32.f32 %v203_v31  ;;  %v1782_v31 = vld [vmem:[%s2453_s8 + $0x14] ss:$8 sps:$4 sm:$0xff]   ;;  %v1780_v32 = vld [vmem:[%s2453_s8 + $0x10] ss:$8 sps:$4 sm:$0xff]  }
 0x10d   :  { %v208_v34 = vand.u32 2147483647, %v207_v33  ;;  %v1785_v33 = vld [vmem:[%s2453_s8 + $0x24] ss:$8 sps:$4 sm:$0xff]  }
 0x10f   :  { %v211_v36 = vmul.f32 %v210_v35, %v208_v34  ;;  %v1783_v34 = vld [vmem:[%s2453_s8 + $0x20] ss:$8 sps:$4 sm:$0xff]   ;;  %v1788_v35 = vld [vmem:[%s2453_s8 + $0x34] ss:$8 sps:$4 sm:$0xff]  }
 0x111   :  { %v212_v38 = vxor.u32 2147483648, %v211_v36 }
 0x113   :  { %v213_v39 = vsel %vm130_vm11, %v212_v38, %v211_v36  ;;  %v1786_v36 = vld [vmem:[%s2453_s8 + $0x30] ss:$8 sps:$4 sm:$0xff]   ;;  %v1789_v38 = vld [vmem:[%s2453_s8 + $0x40] ss:$8 sps:$4 sm:$0xff]  }
 0x114   :  { %v216_v41 = vsel %vm129_vm12, %v2055_v19, %v213_v39  ;;  %v1743_v19 = vld [vmem:[%s2452_s6 + $0x40] ss:$8 sps:$4 sm:$0xff]   ;;  %v1794_v39 = vld [vmem:[%s2453_s8 + $0x54] ss:$8 sps:$4 sm:$0xff]  }
 0x115   :  { %1889 = vcosq.f32 %v216_v41 }
 0x116   :  { %1891 = vsinq.f32 %v216_v41  ;;  %v1797_v41 = vld [vmem:[%s2453_s8 + $0x64] ss:$8 sps:$4 sm:$0xff]  }
 0x11f   :  { %v1890_v45 = vpop.eup %1889 }
 0x120   :  { %v1892_v46 = vpop.eup %1891  ;;  %v228_v47 = vxor.u32 2147483648, %v1890_v45 }
 0x121   :  { %v225_v48 = vxor.u32 2147483648, %v1892_v46 }
 0x122   :  { %v229_v49 = vsel %vm227_vm13, %v228_v47, %v1892_v46  ;;  %v332_v58 = vsel %vm330_vm5, %v228_v47, %v1892_v46 }
 0x123   :  { %v226_v50 = vsel %vm224_vm14, %v1890_v45, %v225_v48  ;;  %v329_v57 = vsel %vm327_vm4, %v1890_v45, %v225_v48 }
 0x124   :  { %v230_v25 = vsel %vm223_vm15, %v226_v50, %v229_v49  ;;  %v333_v61 = vsel %vm326_vm6, %v329_v57, %v332_v58  ;;  %v540_v49 = vlaneseq  ;;  %v538_v57 = vld [vmem:[%s2454_s5] sm:$0x3] }
 0x125   :  { %v231_v51 = vsel %vm220_vm2, nan, %v230_v25  ;;  %v334_v62 = vsel %vm220_vm2, nan, %v333_v61 }
 0x126   :  { %v337_v52 = vpack.c.bf16 %v231_v51, %v231_v51  ;;  %v467_v63 = vpack.c.bf16 %v334_v62, %v334_v62  ;;  %v541_v50 = vshrl.u32 %v540_v49, 7  ;;  %v1846_v49 = vld [vmem:[%s2455_s10 + $0x70] ss:$8 sps:$4 sm:$0xff]  }
 0x128   :  { %1546 = vmatmul.mubr.msk.bf16.vlgmr.msra.gmra.mrb[4].mxu0 %vm356_vm3, %v337_v52  ;;  %v2230_v58 = vsub.s32 1, %v541_v50 }
 0x129   :  { %427 = vmatpush1.bf16.msra.mxu0 %v2035_v12  ;;  %458 = vmatprep.mubr.bf16.mxu0 %v1927_v9  ;;  %v1552_v12 = vcombine.low %v470_v55, %v470_v55 }
 0x12a   :  { %495 = vmatprep.subr.bf16.mxu0 %v1726_v53 }
 0x12b   :  { %v490_v2 = vsel %vm54_vm0, %v1552_v12, 0  ;;  %v547_v12 = vrot.slane %v538_v57, %v2230_v58 }
 0x130   :  { %1549 = vmatmul.mubr.msk.bf16.vlgmr.msra.gmra.mrb[8].mxu0 %vm50_vm1, %v335_v56  ;;  %v2225_v56 = vsub.s32 0, %v541_v50  ;;  %v600_v50 = vld [vmem:[%s2456_s7] sm:$0x3] }
 0x131   :  { %496 = vmatpush1.bf16.msra.mxu0 %v1724_v59  ;;  %527 = vmatprep.mubr.bf16.mxu0 %v1927_v9  ;;  %v1741_v9 = vld [vmem:[%s2452_s6 + $0x44] ss:$8 sps:$4 sm:$0xff]  }
 0x132   :  { %1554 = vmatprep.subr.msk.bf16.mxu0 %vm54_vm0, %v1553_v60  ;;  %780 = vmatprep.subr.bf16.mxu1 %v1741_v9  ;;  %v543_v59 = vrot.slane %v538_v57, %v2225_v56 }
 0x133   :  { %781 = vmatpush1.bf16.msra.mxu1 %v1743_v19 }
 0x134   :  { %782 = vmatprep.subr.bf16.mxu1 %v1744_v3 }
 0x135   :  { %498 = vmatpush1.bf16.msra.mxu0 %v490_v2 }
 0x136   :  { %1033 = vmatprep.subr.bf16.mxu0 %v1779_v30  ;;  %v1821_v30 = vld [vmem:[%s2453_s8 + $0xe4] ss:$8 sps:$4 sm:$0xff]  }
 0x137   :  { %783 = vmatpush1.bf16.msra.mxu1 %v1746_v4 }
 0x138   :  { %1555 = vmatmul.mubr.msk.bf16.vlgmr.msra.gmra.mrb[12].mxu0 %vm356_vm3, %v467_v63  ;;  %784 = vmatprep.subr.bf16.mxu1 %v1747_v5 }
 0x139   :  { %1034 = vmatpush1.bf16.msra.mxu0 %v1777_v29  ;;  %v1816_v29 = vld [vmem:[%s2453_s8 + $0xd0] ss:$8 sps:$4 sm:$0xff]  }
 0x13a   :  { %1035 = vmatprep.subr.bf16.mxu0 %v1782_v31  ;;  %v1819_v31 = vld [vmem:[%s2453_s8 + $0xe0] ss:$8 sps:$4 sm:$0xff]  }
 0x13b   :  { %785 = vmatpush1.bf16.msra.mxu1 %v1749_v6 }
 0x13c   :  { %786 = vmatprep.subr.bf16.mxu1 %v1750_v7 }
 0x13d   :  { %1036 = vmatpush1.bf16.msra.mxu0 %v1780_v32  ;;  %v1824_v32 = vld [vmem:[%s2453_s8 + $0xf4] ss:$8 sps:$4 sm:$0xff]  }
 0x13e   :  { %1037 = vmatprep.subr.bf16.mxu0 %v1785_v33  ;;  %v1822_v33 = vld [vmem:[%s2453_s8 + $0xf0] ss:$8 sps:$4 sm:$0xff]  }
 0x13f   :  { %787 = vmatpush1.bf16.msra.mxu1 %v1752_v8 }
 0x140   :  { %788 = vmatprep.subr.bf16.mxu1 %v1753_v10 }
 0x141   :  { %1038 = vmatpush1.bf16.msra.mxu0 %v1783_v34  ;;  %v1825_v34 = vld [vmem:[%s2455_s10] ss:$8 sps:$4 sm:$0xff]  }
 0x142   :  { %1039 = vmatprep.subr.bf16.mxu0 %v1788_v35  ;;  %v1827_v35 = vld [vmem:[%s2455_s10 + $0x4] ss:$8 sps:$4 sm:$0xff]  }
 0x143   :  { %789 = vmatpush1.bf16.msra.mxu1 %v1755_v11 }
 0x144   :  { %790 = vmatprep.subr.bf16.mxu1 %v1756_v13 }
 0x145   :  { %1040 = vmatpush1.bf16.msra.mxu0 %v1786_v36  ;;  %v1830_v36 = vld [vmem:[%s2455_s10 + $0x14] ss:$8 sps:$4 sm:$0xff]  }
 0x146   :  { %1041 = vmatprep.subr.bf16.mxu0 %v1791_v37  ;;  %v1828_v37 = vld [vmem:[%s2455_s10 + $0x10] ss:$8 sps:$4 sm:$0xff]  }
 0x147   :  { %791 = vmatpush1.bf16.msra.mxu1 %v1758_v14 }
 0x148   :  { %792 = vmatprep.subr.bf16.mxu1 %v1759_v15 }
 0x149   :  { %1042 = vmatpush1.bf16.msra.mxu0 %v1789_v38  ;;  %v1833_v38 = vld [vmem:[%s2455_s10 + $0x24] ss:$8 sps:$4 sm:$0xff]  }
 0x14a   :  { %1043 = vmatprep.subr.bf16.mxu0 %v1794_v39  ;;  %v1831_v39 = vld [vmem:[%s2455_s10 + $0x20] ss:$8 sps:$4 sm:$0xff]  }
 0x14b   :  { %793 = vmatpush1.bf16.msra.mxu1 %v1761_v16  ;;  %v1803_v16 = vld [vmem:[%s2453_s8 + $0x84] ss:$8 sps:$4 sm:$0xff]  }
 0x14c   :  { %794 = vmatprep.subr.bf16.mxu1 %v1762_v17  ;;  %v1801_v17 = vld [vmem:[%s2453_s8 + $0x80] ss:$8 sps:$4 sm:$0xff]  }
 0x14d   :  { %1044 = vmatpush1.bf16.msra.mxu0 %v1792_v40  ;;  %v1836_v40 = vld [vmem:[%s2455_s10 + $0x34] ss:$8 sps:$4 sm:$0xff]  }
 0x14e   :  { %1045 = vmatprep.subr.bf16.mxu0 %v1797_v41  ;;  %v1834_v41 = vld [vmem:[%s2455_s10 + $0x30] ss:$8 sps:$4 sm:$0xff]  }
 0x14f   :  { %795 = vmatpush1.bf16.msra.mxu1 %v1764_v18  ;;  %v1806_v18 = vld [vmem:[%s2453_s8 + $0x94] ss:$8 sps:$4 sm:$0xff]  }
 0x150   :  { %796 = vmatprep.subr.bf16.mxu1 %v1765_v20  ;;  %v1804_v20 = vld [vmem:[%s2453_s8 + $0x90] ss:$8 sps:$4 sm:$0xff]  }
 0x151   :  { %1046 = vmatpush1.bf16.msra.mxu0 %v1795_v42  ;;  %v1839_v42 = vld [vmem:[%s2455_s10 + $0x44] ss:$8 sps:$4 sm:$0xff]  }
 0x152   :  { %1047 = vmatprep.subr.bf16.mxu0 %v1800_v43  ;;  %v1837_v43 = vld [vmem:[%s2455_s10 + $0x40] ss:$8 sps:$4 sm:$0xff]  }
 0x153   :  { %797 = vmatpush1.bf16.msra.mxu1 %v1767_v21  ;;  %v1809_v21 = vld [vmem:[%s2453_s8 + $0xa4] ss:$8 sps:$4 sm:$0xff]  }
 0x154   :  { %798 = vmatprep.subr.bf16.mxu1 %v1768_v22  ;;  %v1807_v22 = vld [vmem:[%s2453_s8 + $0xa0] ss:$8 sps:$4 sm:$0xff]  }
 0x155   :  { %1048 = vmatpush1.bf16.msra.mxu0 %v1798_v44  ;;  %v1842_v44 = vld [vmem:[%s2455_s10 + $0x54] ss:$8 sps:$4 sm:$0xff]  }
 0x156   :  { %1049 = vmatprep.subr.bf16.mxu0 %v1803_v16  ;;  %v1861_v16 = vld [vmem:[%s2455_s10 + $0xc0] ss:$8 sps:$4 sm:$0xff]  }
 0x157   :  { %799 = vmatpush1.bf16.msra.mxu1 %v1770_v23  ;;  %v1812_v23 = vld [vmem:[%s2453_s8 + $0xb4] ss:$8 sps:$4 sm:$0xff]  }
 0x158   :  { %800 = vmatprep.subr.bf16.mxu1 %v1771_v24  ;;  %v1810_v24 = vld [vmem:[%s2453_s8 + $0xb0] ss:$8 sps:$4 sm:$0xff]  }
 0x159   :  { %1050 = vmatpush1.bf16.msra.mxu0 %v1801_v17  ;;  %v1866_v17 = vld [vmem:[%s2455_s10 + $0xd4] ss:$8 sps:$4 sm:$0xff]  }
 0x15a   :  { %1051 = vmatprep.subr.bf16.mxu0 %v1806_v18  ;;  %v1864_v18 = vld [vmem:[%s2455_s10 + $0xd0] ss:$8 sps:$4 sm:$0xff]  }
 0x15b   :  { %801 = vmatpush1.bf16.msra.mxu1 %v1773_v26  ;;  %v1815_v26 = vld [vmem:[%s2453_s8 + $0xc4] ss:$8 sps:$4 sm:$0xff]  }
 0x15c   :  { %802 = vmatprep.subr.bf16.mxu1 %v1774_v27  ;;  %v1813_v27 = vld [vmem:[%s2453_s8 + $0xc0] ss:$8 sps:$4 sm:$0xff]  }
 0x15d   :  { %1052 = vmatpush1.bf16.msra.mxu0 %v1804_v20  ;;  %v1869_v20 = vld [vmem:[%s2455_s10 + $0xe4] ss:$8 sps:$4 sm:$0xff]  }
 0x15e   :  { %1053 = vmatprep.subr.bf16.mxu0 %v1809_v21  ;;  %v1867_v21 = vld [vmem:[%s2455_s10 + $0xe0] ss:$8 sps:$4 sm:$0xff]  }
 0x15f   :  { %803 = vmatpush1.bf16.msra.mxu1 %v1776_v28  ;;  %v1818_v28 = vld [vmem:[%s2453_s8 + $0xd4] ss:$8 sps:$4 sm:$0xff]  }
 0x160   :  { %1294 = vmatprep.subr.bf16.mxu1 %v1827_v35 }
 0x161   :  { %1054 = vmatpush1.bf16.msra.mxu0 %v1807_v22  ;;  %v1872_v22 = vld [vmem:[%s2455_s10 + $0xf4] ss:$8 sps:$4 sm:$0xff]  }
 0x162   :  { %1055 = vmatprep.subr.bf16.mxu0 %v1812_v23  ;;  %v1870_v23 = vld [vmem:[%s2455_s10 + $0xf0] ss:$8 sps:$4 sm:$0xff]  }
 0x165   :  { %1056 = vmatpush1.bf16.msra.mxu0 %v1810_v24  ;;  %v861_v24 = vld [vmem:[%s2457_s9] sm:$0x3] }
 0x166   :  { %1057 = vmatprep.subr.bf16.mxu0 %v1815_v26  ;;  %v866_v26 = vrot.slane %v861_v24, %v2225_v56 }
 0x169   :  { %1058 = vmatpush1.bf16.msra.mxu0 %v1813_v27  ;;  %v870_v27 = vrot.slane %v861_v24, %v2230_v58 }
 0x16a   :  { %1059 = vmatprep.subr.bf16.mxu0 %v1818_v28 }
 0x16d   :  { %1060 = vmatpush1.bf16.msra.mxu0 %v1816_v29 }
 0x16e   :  { %1061 = vmatprep.subr.bf16.mxu0 %v1821_v30 }
 0x171   :  { %1062 = vmatpush1.bf16.msra.mxu0 %v1819_v31 }
 0x172   :  { %1063 = vmatprep.subr.bf16.mxu0 %v1824_v32 }
 0x175   :  { %1064 = vmatpush1.bf16.msra.mxu0 %v1822_v33 }
 0x1fb   :  { %v400_v45 = vpop.f32.mrb[4].mxu0 }
 0x1fc   :  { %v402_v46 = vpop.f32.mrb[5].mxu0 }
 0x1fd   :  { %v404_v47 = vpop.f32.mrb[6].mxu0 }
 0x1fe   :  { %v405_v48 = vpop.f32.mrb[7].mxu0  ;;  %v1843_v47 = vld [vmem:[%s2455_s10 + $0x60] ss:$8 sps:$4 sm:$0xff]  }
 0x1ff   :  { %v1848_v48 = vld [vmem:[%s2455_s10 + $0x74] ss:$8 sps:$4 sm:$0xff]  }
 0x203   :  { %v460_v25 = vpop.f32.mrb[8].mxu0 }
 0x204   :  { %v461_v51 = vadd.f32 %v460_v25, %v400_v45  ;;  %v462_v52 = vpop.f32.mrb[9].mxu0  ;;  %v1840_v45 = vld [vmem:[%s2455_s10 + $0x50] ss:$8 sps:$4 sm:$0xff]   ;;  %v605_v25 = vrot.slane %v600_v50, %v2225_v56 }
 0x205   :  { %v463_v53 = vadd.f32 %v462_v52, %v402_v46  ;;  %v464_v54 = vpop.f32.mrb[10].mxu0  ;;  %v1845_v46 = vld [vmem:[%s2455_s10 + $0x64] ss:$8 sps:$4 sm:$0xff]  }
 0x206   :  { %v465_v55 = vpop.f32.mrb[11].mxu0 }
 0x20b   :  { %v529_v60 = vpop.f32.mrb[12].mxu0 }
 0x20c   :  { %v536_v61 = vadd.f32 %v529_v60, %v461_v51  ;;  %v531_v2 = vpop.f32.mrb[13].mxu0  ;;  %v609_v51 = vrot.slane %v600_v50, %v2230_v58  ;;  %v1877_v50 = vld [vmem:[%s2458_s12 + $0x50] sm:$0xff]  }
 0x20d   :  { %v537_v62 = vadd.f32 %v531_v2, %v463_v53  ;;  %v533_v63 = vpop.f32.mrb[14].mxu0 }
 0x20e   :  { %v550_v0 = vadd.f32 %v543_v59, %v536_v61  ;;  %v534_v1 = vpop.f32.mrb[15].mxu0 }
 0x20f   :  { %v551_v9 = vadd.f32 %v547_v12, %v537_v62 }
 0x210   :  { %v1556_v19 = vmul.f32 -1.442695, %v550_v0 }
 0x211   :  { %v1557_v3 = vmul.f32 -1.442695, %v551_v9 }
 0x212   :  { %1893 = vpow2.f32 %v1556_v19 }
 0x213   :  { %1895 = vpow2.f32 %v1557_v3 }
 0x21c   :  { %v1894_v4 = vpop.eup %1893 }
 0x21d   :  { %v1896_v5 = vpop.eup %1895  ;;  %v558_v6 = vadd.f32 1.0, %v1894_v4 }
 0x21e   :  { %v559_v7 = vadd.f32 1.0, %v1896_v5  ;;  %v1851_v5 = vld [vmem:[%s2455_s10 + $0x84] ss:$8 sps:$4 sm:$0xff]  }
 0x21f   :  { %1897 = vrcp.f32 %v558_v6  ;;  %v1849_v6 = vld [vmem:[%s2455_s10 + $0x80] ss:$8 sps:$4 sm:$0xff]  }
 0x220   :  { %1899 = vrcp.f32 %v559_v7  ;;  %v1854_v7 = vld [vmem:[%s2455_s10 + $0x94] ss:$8 sps:$4 sm:$0xff]  }
 0x229   :  { %v1898_v8 = vpop.eup %1897 }
 0x22a   :  { %v1900_v10 = vpop.eup %1899  ;;  %v564_v11 = vmul.f32 %v1898_v8, %v550_v0  ;;  %v1852_v8 = vld [vmem:[%s2455_s10 + $0x90] ss:$8 sps:$4 sm:$0xff]  }
 0x22b   :  { %v565_v13 = vmul.f32 %v1900_v10, %v551_v9  ;;  %v1857_v10 = vld [vmem:[%s2455_s10 + $0xa4] ss:$8 sps:$4 sm:$0xff]  }
 0x22c   :  { %v566_v15 = vpack.c.bf16 %v564_v11, %v564_v11  ;;  %v1855_v11 = vld [vmem:[%s2455_s10 + $0xa0] ss:$8 sps:$4 sm:$0xff]  }
 0x22d   :  { %v567_v14 = vpack.c.bf16 %v565_v13, %v565_v13  ;;  %v1860_v13 = vld [vmem:[%s2455_s10 + $0xb4] ss:$8 sps:$4 sm:$0xff]  }
 0x22f   :  { %804 = vmatprep.mubr.bf16.mxu1 %v567_v14  ;;  %v1858_v14 = vld [vmem:[%s2455_s10 + $0xb0] ss:$8 sps:$4 sm:$0xff]  }
 0x230   :  { %805 = vmatmul.mubr.bf16.vlgmr.msra.gmra.mrb[0].mxu1 %v566_v15  ;;  %v1863_v15 = vld [vmem:[%s2455_s10 + $0xc4] ss:$8 sps:$4 sm:$0xff]  }
 0x231   :  { %1295 = vmatpush1.bf16.msra.mxu1 %v1825_v34 }
 0x232   :  { %1296 = vmatprep.subr.bf16.mxu1 %v1830_v36 }
 0x235   :  { %1297 = vmatpush1.bf16.msra.mxu1 %v1828_v37 }
 0x236   :  { %1298 = vmatprep.subr.bf16.mxu1 %v1833_v38 }
 0x239   :  { %1299 = vmatpush1.bf16.msra.mxu1 %v1831_v39 }
 0x23a   :  { %1300 = vmatprep.subr.bf16.mxu1 %v1836_v40 }
 0x23d   :  { %1301 = vmatpush1.bf16.msra.mxu1 %v1834_v41 }
 0x23e   :  { %1302 = vmatprep.subr.bf16.mxu1 %v1839_v42 }
 0x241   :  { %1303 = vmatpush1.bf16.msra.mxu1 %v1837_v43 }
 0x242   :  { %1304 = vmatprep.subr.bf16.mxu1 %v1842_v44 }
 0x245   :  { %1305 = vmatpush1.bf16.msra.mxu1 %v1840_v45 }
 0x246   :  { %1306 = vmatprep.subr.bf16.mxu1 %v1845_v46  ;;  %v1873_v46 = vld [vmem:[%s2458_s12 + $0x40] sm:$0xff]  }
 0x247   :  { %1679 = vmatprep.subr.bf16.mxu0 %v1873_v46 }
 0x249   :  { %1307 = vmatpush1.bf16.msra.mxu1 %v1843_v47  ;;  %v1874_v47 = vld [vmem:[%s2458_s12] sm:$0xff]  }
 0x24a   :  { %1308 = vmatprep.subr.bf16.mxu1 %v1848_v48  ;;  %v1875_v48 = vld [vmem:[%s2458_s12 + $0x48] sm:$0xff]  }
 0x24d   :  { %1309 = vmatpush1.bf16.msra.mxu1 %v1846_v49  ;;  %v1876_v49 = vld [vmem:[%s2458_s12 + $0x8] sm:$0xff]  }
 0x24e   :  { %1310 = vmatprep.subr.bf16.mxu1 %v1851_v5 }
 0x251   :  { %1311 = vmatpush1.bf16.msra.mxu1 %v1849_v6 }
 0x252   :  { %1312 = vmatprep.subr.bf16.mxu1 %v1854_v7 }
 0x255   :  { %1313 = vmatpush1.bf16.msra.mxu1 %v1852_v8 }
 0x256   :  { %1314 = vmatprep.subr.bf16.mxu1 %v1857_v10 }
 0x259   :  { %1315 = vmatpush1.bf16.msra.mxu1 %v1855_v11 }
 0x25a   :  { %1316 = vmatprep.subr.bf16.mxu1 %v1860_v13 }
 0x25d   :  { %1317 = vmatpush1.bf16.msra.mxu1 %v1858_v14 }
 0x25e   :  { %1318 = vmatprep.subr.bf16.mxu1 %v1863_v15 }
 0x261   :  { %1319 = vmatpush1.bf16.msra.mxu1 %v1861_v16 }
 0x262   :  { %1320 = vmatprep.subr.bf16.mxu1 %v1866_v17 }
 0x265   :  { %1321 = vmatpush1.bf16.msra.mxu1 %v1864_v18  ;;  %v1660_v18 = vld [vmem:[%s2460_s13] ss:$0 sm:$0xff] }
 0x266   :  { %1322 = vmatprep.subr.bf16.mxu1 %v1869_v20 }
 0x269   :  { %1323 = vmatpush1.bf16.msra.mxu1 %v1867_v21 }
 0x26a   :  { %1324 = vmatprep.subr.bf16.mxu1 %v1872_v22 }
 0x26d   :  { %1325 = vmatpush1.bf16.msra.mxu1 %v1870_v23 }
 0x303   :  { %v806_v52 = vpop.f32.mrb[0].mxu1 }
 0x304   :  { %v807_v53 = vadd.f32 %v806_v52, %v605_v25  ;;  %v808_v54 = vpop.f32.mrb[1].mxu1  ;;  %v1878_v25 = vld [vmem:[%s2458_s12 + $0x10] sm:$0xff]   ;;  %v1880_v52 = vld [vmem:[%s2458_s12 + $0x18] sm:$0xff]  }
 0x305   :  { %v809_v55 = vadd.f32 %v808_v54, %v609_v51  ;;  %v810_v57 = vpop.f32.mrb[2].mxu1  ;;  %v1879_v51 = vld [vmem:[%s2458_s12 + $0x58] sm:$0xff]   ;;  %v1882_v54 = vld [vmem:[%s2458_s12 + $0x20] sm:$0xff]  }
 0x306   :  { %v1590_v59 = vmul.f32 -1.442695, %v807_v53  ;;  %v811_v60 = vpop.f32.mrb[3].mxu1  ;;  %v1884_v57 = vld [vmem:[%s2458_s12 + $0x28] sm:$0xff]  }
 0x307   :  { %v1591_v12 = vmul.f32 -1.442695, %v809_v55  ;;  %v1886_v60 = vld [vmem:[%s2458_s12 + $0x30] sm:$0xff]  }
 0x308   :  { %1901 = vpow2.f32 %v1590_v59  ;;  %v1885_v59 = vld [vmem:[%s2458_s12 + $0x70] sm:$0xff]  }
 0x309   :  { %1903 = vpow2.f32 %v1591_v12  ;;  %v1887_v12 = vld [vmem:[%s2458_s12 + $0x78] sm:$0xff]  }
 0x312   :  { %v1902_v61 = vpop.eup %1901 }
 0x313   :  { %v1904_v2 = vpop.eup %1903  ;;  %v819_v62 = vadd.f32 1.0, %v1902_v61  ;;  %v1888_v61 = vld [vmem:[%s2458_s12 + $0x38] sm:$0xff]  }
 0x314   :  { %v820_v63 = vadd.f32 1.0, %v1904_v2  ;;  %v1122_v2 = vld [vmem:[%s2459_s11] sm:$0x3] }
 0x315   :  { %1905 = vrcp.f32 %v819_v62  ;;  %v1127_v62 = vrot.slane %v1122_v2, %v2225_v56 }
 0x316   :  { %1907 = vrcp.f32 %v820_v63  ;;  %v1131_v63 = vrot.slane %v1122_v2, %v2230_v58 }
 0x31f   :  { %v1906_v0 = vpop.eup %1905 }
 0x320   :  { %v1908_v1 = vpop.eup %1907  ;;  %v825_v9 = vmul.f32 %v1906_v0, %v807_v53  ;;  %v1881_v53 = vld [vmem:[%s2458_s12 + $0x60] sm:$0xff]  }
 0x321   :  { %v826_v19 = vmul.f32 %v1908_v1, %v809_v55  ;;  %v1883_v55 = vld [vmem:[%s2458_s12 + $0x68] sm:$0xff]  }
 0x322   :  { %v827_v4 = vpack.c.bf16 %v825_v9, %v825_v9 }
 0x323   :  { %v828_v3 = vpack.c.bf16 %v826_v19, %v826_v19 }
 0x325   :  { %1065 = vmatprep.mubr.bf16.mxu0 %v828_v3 }
 0x326   :  { %1066 = vmatmul.mubr.bf16.vlgmr.msra.gmra.mrb[16].mxu0 %v827_v4 }
 0x327   :  { %1680 = vmatpush3.bf16.msra.mxu0 %v1874_v47 }
 0x328   :  { %1681 = vmatprep.subr.bf16.mxu0 %v1875_v48 }
 0x32b   :  { %1682 = vmatpush3.bf16.msra.mxu0 %v1876_v49 }
 0x32c   :  { %1683 = vmatprep.subr.bf16.mxu0 %v1877_v50 }
 0x32f   :  { %1684 = vmatpush3.bf16.msra.mxu0 %v1878_v25 }
 0x330   :  { %1685 = vmatprep.subr.bf16.mxu0 %v1879_v51 }
 0x333   :  { %1686 = vmatpush3.bf16.msra.mxu0 %v1880_v52 }
 0x334   :  { %1687 = vmatprep.subr.bf16.mxu0 %v1881_v53 }
 0x337   :  { %1688 = vmatpush3.bf16.msra.mxu0 %v1882_v54 }
 0x338   :  { %1689 = vmatprep.subr.bf16.mxu0 %v1883_v55 }
 0x33b   :  { %1690 = vmatpush3.bf16.msra.mxu0 %v1884_v57 }
 0x33c   :  { %1691 = vmatprep.subr.bf16.mxu0 %v1885_v59 }
 0x33f   :  { %1692 = vmatpush3.bf16.msra.mxu0 %v1886_v60 }
 0x340   :  { %1693 = vmatprep.subr.bf16.mxu0 %v1887_v12 }
 0x343   :  { %1694 = vmatpush3.bf16.msra.mxu0 %v1888_v61 }
 0x3f9   :  { %v1067_v28 = vpop.f32.mrb[16].mxu0 }
 0x3fa   :  { %v1068_v29 = vadd.f32 %v1067_v28, %v866_v26  ;;  %v1069_v30 = vpop.f32.mrb[17].mxu0 }
 0x3fb   :  { %v1070_v31 = vadd.f32 %v1069_v30, %v870_v27  ;;  %v1071_v32 = vpop.f32.mrb[18].mxu0 }
 0x3fc   :  { %v1624_v33 = vmul.f32 -1.442695, %v1068_v29  ;;  %v1072_v34 = vpop.f32.mrb[19].mxu0 }
 0x3fd   :  { %v1625_v35 = vmul.f32 -1.442695, %v1070_v31 }
 0x3fe   :  { %1909 = vpow2.f32 %v1624_v33 }
 0x3ff   :  { %1911 = vpow2.f32 %v1625_v35 }
 0x408   :  { %v1910_v36 = vpop.eup %1909 }
 0x409   :  { %v1912_v37 = vpop.eup %1911  ;;  %v1080_v38 = vadd.f32 1.0, %v1910_v36 }
 0x40a   :  { %v1081_v39 = vadd.f32 1.0, %v1912_v37 }
 0x40b   :  { %1913 = vrcp.f32 %v1080_v38 }
 0x40c   :  { %1915 = vrcp.f32 %v1081_v39 }
 0x415   :  { %v1914_v40 = vpop.eup %1913 }
 0x416   :  { %v1916_v41 = vpop.eup %1915  ;;  %v1086_v42 = vmul.f32 %v1914_v40, %v1068_v29 }
 0x417   :  { %v1087_v43 = vmul.f32 %v1916_v41, %v1070_v31 }
 0x418   :  { %v1088_v45 = vpack.c.bf16 %v1086_v42, %v1086_v42 }
 0x419   :  { %v1089_v44 = vpack.c.bf16 %v1087_v43, %v1087_v43 }
 0x41b   :  { %1326 = vmatprep.mubr.bf16.mxu1 %v1089_v44 }
 0x41c   :  { %1327 = vmatmul.mubr.bf16.vlgmr.msra.gmra.mrb[4].mxu1 %v1088_v45 }
 0x4ef   :  { %v1328_v0 = vpop.f32.mrb[4].mxu1 }
 0x4f0   :  { %v1329_v1 = vadd.f32 %v1328_v0, %v1127_v62  ;;  %v1330_v9 = vpop.f32.mrb[5].mxu1 }
 0x4f1   :  { %v1331_v19 = vadd.f32 %v1330_v9, %v1131_v63  ;;  %v1332_v3 = vpop.f32.mrb[6].mxu1 }
 0x4f2   :  { %v1658_v4 = vmul.f32 -1.442695, %v1329_v1  ;;  %v1333_v5 = vpop.f32.mrb[7].mxu1 }
 0x4f3   :  { %v1659_v6 = vmul.f32 -1.442695, %v1331_v19 }
 0x4f4   :  { %1917 = vpow2.f32 %v1658_v4 }
 0x4f5   :  { %1919 = vpow2.f32 %v1659_v6 }
 0x4fe   :  { %v1918_v7 = vpop.eup %1917 }
 0x4ff   :  { %v1920_v8 = vpop.eup %1919  ;;  %v1341_v10 = vadd.f32 1.0, %v1918_v7 }
 0x500   :  { %v1342_v11 = vadd.f32 1.0, %v1920_v8 }
 0x501   :  { %1921 = vrcp.f32 %v1341_v10 }
 0x502   :  { %1923 = vrcp.f32 %v1342_v11 }
 0x50b   :  { %v1922_v13 = vpop.eup %1921 }
 0x50c   :  { %v1924_v56 = vpop.eup %1923  ;;  %v1347_v14 = vmul.f32 %v1922_v13, %v1329_v1 }
 0x50d   :  { %v1348_v58 = vmul.f32 %v1924_v56, %v1331_v19 }
 0x50e   :  { %v1349_v16 = vpack.c.bf16 %v1347_v14, %v1347_v14 }
 0x50f   :  { %v1350_v15 = vpack.c.bf16 %v1348_v58, %v1348_v58 }
 0x511   :  { %1518 = vmatprep.mubr.bf16.mxu0 %v1350_v15 }
 0x512   :  { %1519 = vmatmul.mubr.bf16.vlgmr.msra.gmra.mrb[20].mxu0 %v1349_v16 }
 0x5e5   :  { %v1695_v17 = vpop.f32.mrb[20].mxu0 }
 0x5e6   :  { %v1696_v20 = vpop.f32.mrb[21].mxu0 }
 0x5e7   :  { %v1697_v21 = vadd.f32 %v1696_v20, %v1695_v17  ;;  %v1698_v22 = vpop.f32.mrb[22].mxu0 }
 0x5e8   :  { %v1699_v23 = vpop.f32.mrb[23].mxu0 }
 0x5e9   :  { %v1521_v24 = vadd.f32 %v1697_v21, %v1660_v18 }
 0x5eb   :  { %1526 = vst [vmem:[%s2461_s14] sm:$0xff] %v1521_v24 }

</bundles_post_ra>
